<compile_context>
chip_gen: v7x
topology: tpu7x:2x2x1
jax: 0.10.0
libtpu: 0.0.40
codegen_flags: <defaults>
</compile_context>

<pallas_src>
import jax
import jax.numpy as jnp
from jax import lax
from jax.experimental import pallas as pl
from jax.experimental.pallas import tpu as pltpu


def attention_kernel(q_ref, v_ref, wq_ref, bq_ref, wkv_ref, bkv_ref, o_ref):
    D = q_ref.shape[-1]

    # Projections. Weights arrive pre-transposed: y = x @ W_t + b.
    tq = jnp.dot(q_ref[...], wq_ref[...],
                 preferred_element_type=jnp.float32) + bq_ref[...]        # (1, D)
    kv = jnp.dot(v_ref[...], wkv_ref[...],
                 preferred_element_type=jnp.float32) + bkv_ref[...]       # (N, 2D)
    tk = kv[:, :D]  # key half, lane offset 0 (aligned slice, free)
    # kv[:, D:] holds the value projection already scaled by 1/D (folded in wrapper).

    # Alignment scores (1, N): contract the feature dims directly, no transpose of tk.
    align = lax.dot_general(tq, tk, (((1,), (1,)), ((), ())),
                            preferred_element_type=jnp.float32)

    # Softmax over the database axis.
    m = jnp.max(align, axis=-1, keepdims=True)
    e = jnp.exp(align - m)
    attn = e * pl.reciprocal(jnp.sum(e, axis=-1, keepdims=True), approx=True)

    # attn @ kv yields [attn@K | attn@(V/D)] in one MXU pass; keep the value half.
    full = jnp.dot(attn, kv, preferred_element_type=jnp.float32)          # (1, 2D)
    o_ref[...] = full[:, D:].astype(o_ref.dtype)


def attention_forward(q, v, wq, bq, wk, bk, wv, bv):
    """q: (1, D); v: (N, D); wq/wk/wv: (D, D) in nn.Linear (out, in) convention;
    bq/bk/bv: (1, D). Returns (1, D)."""
    D = q.shape[-1]
    inv_d = jnp.float32(1.0 / D)

    # Pre-transpose once so the kernel never transposes; fuse K and V projections,
    # folding the trailing /D into the V half of the packed weight/bias.
    wq_t = wq.T                                             # (D, D)
    wkv_t = jnp.concatenate([wk.T, wv.T * inv_d], axis=1)   # (D, 2D)
    bkv = jnp.concatenate([bk, bv * inv_d], axis=1)         # (1, 2D)

    vmem = pl.BlockSpec(memory_space=pltpu.MemorySpace.VMEM)
    return pl.pallas_call(
        attention_kernel,
        out_shape=jax.ShapeDtypeStruct((1, D), q.dtype),
        grid=(),
        in_specs=[vmem] * 6,
        out_specs=vmem,
    )(q, v, wq_t, bq, wkv_t, bkv)


def attention_reference(q, v, wq, bq, wk, bk, wv, bv):
    tq = q @ wq.T + bq
    tk = v @ wk.T + bk
    tv = v @ wv.T + bv
    align = tq @ tk.T
    attn = jax.nn.softmax(align, axis=-1)
    return (attn @ tv) / tk.shape[-1]


if __name__ == "__main__":
    D = 32   # input_dim
    N = 8    # database size

    key = jax.random.PRNGKey(0)
    kq, kv_, kwq, kbq, kwk, kbk, kwv, kbv = jax.random.split(key, 8)

    q = jax.random.normal(kq, (1, D), dtype=jnp.float32)
    v = jax.random.normal(kv_, (N, D), dtype=jnp.float32)

    # Deterministic parameter init (uniform in [-1/sqrt(D), 1/sqrt(D)], like nn.Linear).
    bound = 1.0 / jnp.sqrt(jnp.float32(D))
    init = lambda k, shape: jax.random.uniform(k, shape, jnp.float32, -bound, bound)
    wq = init(kwq, (D, D)); bq = init(kbq, (1, D))
    wk = init(kwk, (D, D)); bk = init(kbk, (1, D))
    wv = init(kwv, (D, D)); bv = init(kbv, (1, D))

    out = attention_forward(q, v, wq, bq, wk, bk, wv, bv)
    out = jax.block_until_ready(out)

    ref = attention_reference(q, v, wq, bq, wk, bk, wv, bv)
    assert out.shape == (1, D)
    # Tolerance accounts for the approx-reciprocal softmax normalization (EUP vrcp).
    assert jnp.allclose(out, ref, atol=1e-4, rtol=1e-4), "mismatch vs reference"

    print("KERNEL_OK")
</pallas_src>

<mosaic_0001>
module attributes {stable_mosaic.version = 11 : i64} {
  func.func @attention_kernel(%arg0: memref<1x32xf32, #tpu.memory_space<vmem>>, %arg1: memref<8x32xf32, #tpu.memory_space<vmem>>, %arg2: memref<32x32xf32, #tpu.memory_space<vmem>>, %arg3: memref<1x32xf32, #tpu.memory_space<vmem>>, %arg4: memref<32x64xf32, #tpu.memory_space<vmem>>, %arg5: memref<1x64xf32, #tpu.memory_space<vmem>>, %arg6: memref<1x32xf32, #tpu.memory_space<vmem>>) attributes {dimension_semantics = [], scalar_prefetch = 0 : i64, scratch_operands = 0 : i64, tpu.core_type = #tpu.core_type<tc>} {
    %c0 = arith.constant 0 : index
    %c0_0 = arith.constant 0 : index
    %0 = vector.load %arg0[%c0, %c0_0] : memref<1x32xf32, #tpu.memory_space<vmem>>, vector<1x32xf32>
    %c0_1 = arith.constant 0 : index
    %c0_2 = arith.constant 0 : index
    %1 = vector.load %arg2[%c0_1, %c0_2] : memref<32x32xf32, #tpu.memory_space<vmem>>, vector<32x32xf32>
    %cst = arith.constant dense<0.000000e+00> : vector<1x32xf32>
    %2 = tpu.matmul %0, %1, %cst {dimension_numbers = #tpu.dot_dimension_numbers<[1], [0], [0], [1], [0, 0, 1, 1], [], []>} : vector<1x32xf32>, vector<32x32xf32>, vector<1x32xf32> -> vector<1x32xf32>
    %c0_3 = arith.constant 0 : index
    %c0_4 = arith.constant 0 : index
    %3 = vector.load %arg3[%c0_3, %c0_4] : memref<1x32xf32, #tpu.memory_space<vmem>>, vector<1x32xf32>
    %4 = arith.addf %2, %3 : vector<1x32xf32>
    %c0_5 = arith.constant 0 : index
    %c0_6 = arith.constant 0 : index
    %5 = vector.load %arg1[%c0_5, %c0_6] : memref<8x32xf32, #tpu.memory_space<vmem>>, vector<8x32xf32>
    %c0_7 = arith.constant 0 : index
    %c0_8 = arith.constant 0 : index
    %6 = vector.load %arg4[%c0_7, %c0_8] : memref<32x64xf32, #tpu.memory_space<vmem>>, vector<32x64xf32>
    %cst_9 = arith.constant dense<0.000000e+00> : vector<8x64xf32>
    %7 = tpu.matmul %5, %6, %cst_9 {dimension_numbers = #tpu.dot_dimension_numbers<[1], [0], [0], [1], [0, 0, 1, 1], [], []>} : vector<8x32xf32>, vector<32x64xf32>, vector<8x64xf32> -> vector<8x64xf32>
    %c0_10 = arith.constant 0 : index
    %c0_11 = arith.constant 0 : index
    %8 = vector.load %arg5[%c0_10, %c0_11] : memref<1x64xf32, #tpu.memory_space<vmem>>, vector<1x64xf32>
    %9 = vector.broadcast %8 : vector<1x64xf32> to vector<8x64xf32>
    %10 = arith.addf %7, %9 : vector<8x64xf32>
    %11 = vector.extract_strided_slice %10 {offsets = [0, 0], sizes = [8, 32], strides = [1, 1]} : vector<8x64xf32> to vector<8x32xf32>
    %cst_12 = arith.constant dense<0.000000e+00> : vector<1x8xf32>
    %12 = tpu.matmul %4, %11, %cst_12 {dimension_numbers = #tpu.dot_dimension_numbers<[1], [1], [0], [0], [0, 0, 1, 0], [], []>} : vector<1x32xf32>, vector<8x32xf32>, vector<1x8xf32> -> vector<1x8xf32>
    %cst_13 = arith.constant dense<0xFF800000> : vector<1xf32>
    %13 = vector.multi_reduction <maximumf>, %12, %cst_13 [1] : vector<1x8xf32> to vector<1xf32>
    %14 = vector.shape_cast %13 : vector<1xf32> to vector<1x1xf32>
    %15 = vector.broadcast %14 : vector<1x1xf32> to vector<1x8xf32>
    %16 = arith.subf %12, %15 : vector<1x8xf32>
    %17 = math.exp %16 : vector<1x8xf32>
    %cst_14 = arith.constant dense<0.000000e+00> : vector<1xf32>
    %18 = vector.multi_reduction <add>, %17, %cst_14 [1] : vector<1x8xf32> to vector<1xf32>
    %19 = vector.shape_cast %18 : vector<1xf32> to vector<1x1xf32>
    %20 = tpu.reciprocal %19 {approx = true} : vector<1x1xf32> -> vector<1x1xf32>
    %21 = vector.broadcast %20 : vector<1x1xf32> to vector<1x8xf32>
    %22 = arith.mulf %17, %21 : vector<1x8xf32>
    %cst_15 = arith.constant dense<0.000000e+00> : vector<1x64xf32>
    %23 = tpu.matmul %22, %10, %cst_15 {dimension_numbers = #tpu.dot_dimension_numbers<[1], [0], [0], [1], [0, 0, 1, 1], [], []>} : vector<1x8xf32>, vector<8x64xf32>, vector<1x64xf32> -> vector<1x64xf32>
    %24 = vector.extract_strided_slice %23 {offsets = [0, 32], sizes = [1, 32], strides = [1, 1]} : vector<1x64xf32> to vector<1x32xf32>
    %c0_16 = arith.constant 0 : index
    %c0_17 = arith.constant 0 : index
    %25 = vector.load %arg6[%c0_16, %c0_17] : memref<1x32xf32, #tpu.memory_space<vmem>>, vector<1x32xf32>
    tpu.vector_store %arg6[%c0_16, %c0_17], %24 {strides = array<i32>} : memref<1x32xf32, #tpu.memory_space<vmem>>, vector<1x32xf32>,
    return
  }
}

</mosaic_0001>

<bundles_post_ra>
// kernel: tpu_custom_call.1
= control target key start
LH: loop header
LB: loop body
LE: loop exit
PB: predicated region body
PF: predicated region fallthrough
CT: control target
= control target key end

     0   :  { %11 = vsyncpa [#allocation3], 0  ;;  %s742_s0 = inlined_call_operand.hbm [shape: f32[1,32], index: 0, kind: input, shape index: {}]   ;;  %s743_s1 = inlined_call_operand.hbm [shape: f32[8,32], index: 1, kind: input, shape index: {}]   ;;  %s744_s2 = inlined_call_operand.hbm [shape: f32[32,32], index: 2, kind: input, shape index: {}]   ;;  %s745_s3 = inlined_call_operand.vmem [shape: f32[1,32], index: 3, kind: input, shape index: {}]   ;;  %s746_s4 = inlined_call_operand.hbm [shape: f32[32,64], index: 4, kind: input, shape index: {}]   ;;  %s747_s5 = inlined_call_operand.vmem [shape: f32[1,64], index: 5, kind: input, shape index: {}]   ;;  %s748_s6 = inlined_call_operand.hbm [shape: f32[1,32], index: 6, kind: output, shape index: {}]  }
   0x1   :  { %12 = vsyncpa [#allocation6], 0 }
   0x2   :  { %13 = vsyncpa [#allocation9], 0 }
   0x3   :  { %14 = vsyncpa [#allocation4], 0  ;;  %s622_s21 = smov [#allocation5]   ;;  %s623_s23 = smov [#allocation2]  }
   0x4   :  { %s31_s22 = sshll.u32 %s622_s21, 4  ;;  %s21_s24 = sshll.u32 %s623_s23, 4  ;;  %s32_s22 = int_to_ptr.vmem [resolvable:$true] %s31_s22  ;;  %s22_s24 = int_to_ptr.vmem [resolvable:$true] %s21_s24 }
   0x5   :  { %s504_s27 = scalar_lea.hbm %s743_s1, 128 }
   0x6   :  { %p505_p0 = scmp.ne.s32.totalorder %s743_s1, %s504_s27  ;;  %p508_p1 = scmp.lt.u32.totalorder %s504_s27, %s743_s1 }
   0x8   :  { %p510_p2 = pnand %p508_p1, %p505_p0 }
   0xa   :  { %513 = shalt.err (!%p510_p2)
}
   0xb   :  { %s514_s8 = scalar_lea.vmem %s32_s22, 128  ;;  %p519_p4 = scmp.lt.s32.totalorder %s32_s22, %s32_s22 }
   0xc   :  { %p515_p3 = scmp.ne.s32.totalorder %s32_s22, %s514_s8  ;;  %p520_p5 = scmp.lt.s32.totalorder %s514_s8, %s514_s8 }
   0xe   :  { %p521_p6 = por %p520_p5, %p519_p4 }
  0x10   :  { %p522_p7 = pnand %p521_p6, %p515_p3 }
  0x12   :  { %525 = shalt.err (!%p522_p7)
}
  0x13   :  { %34 = dma.hbm_to_vmem [thread:$0]  %s743_s1, 128, %s32_s22, [#allocation6]  }
  0x14   :  { %s526_s13 = scalar_lea.hbm %s742_s0, 16 }
  0x15   :  { %p527_p8 = scmp.ne.s32.totalorder %s742_s0, %s526_s13  ;;  %p530_p9 = scmp.lt.u32.totalorder %s526_s13, %s742_s0 }
  0x17   :  { %p532_p10 = pnand %p530_p9, %p527_p8 }
  0x19   :  { %535 = shalt.err (!%p532_p10)
}
  0x1a   :  { %s536_s18 = scalar_lea.vmem %s22_s24, 16  ;;  %s540_s19 = scalar_lea.vmem %s22_s24, 32 }
  0x1b   :  { %p537_p11 = scmp.ne.s32.totalorder %s22_s24, %s536_s18  ;;  %p541_p12 = scmp.lt.s32.totalorder %s22_s24, %s22_s24 }
  0x1c   :  { %p542_p13 = scmp.lt.s32.totalorder %s540_s19, %s536_s18 }
  0x1e   :  { %p543_p0 = por %p542_p13, %p541_p12 }
  0x20   :  { %p544_p1 = pnand %p543_p0, %p537_p11 }
  0x22   :  { %547 = shalt.err (!%p544_p1)
}
  0x23   :  { %24 = dma.hbm_to_vmem [thread:$0]  %s742_s0, 16, %s22_s24, [#allocation3]  }
  0x24   :  { %s624_s21 = smov [#allocation7]   ;;  %s548_s26 = scalar_lea.hbm %s744_s2, 512 }
  0x25   :  { %s40_s22 = sshll.u32 %s624_s21, 4  ;;  %p549_p2 = scmp.ne.s32.totalorder %s744_s2, %s548_s26  ;;  %s41_s22 = int_to_ptr.vmem [resolvable:$true] %s40_s22 }
  0x26   :  { %p552_p3 = scmp.lt.u32.totalorder %s548_s26, %s744_s2 }
  0x28   :  { %p554_p4 = pnand %p552_p3, %p549_p2 }
  0x2a   :  { %557 = shalt.err (!%p554_p4)
}
  0x2b   :  { %s558_s7 = scalar_lea.vmem %s41_s22, 512  ;;  %p563_p6 = scmp.lt.s32.totalorder %s41_s22, %s41_s22 }
  0x2c   :  { %p559_p5 = scmp.ne.s32.totalorder %s41_s22, %s558_s7  ;;  %p564_p7 = scmp.lt.s32.totalorder %s558_s7, %s558_s7 }
  0x2e   :  { %p565_p8 = por %p564_p7, %p563_p6 }
  0x30   :  { %p566_p9 = pnand %p565_p8, %p559_p5 }
  0x32   :  { %569 = shalt.err (!%p566_p9)
}
  0x33   :  { %s625_s0 = smov 128   ;;  %s626_s24 = smov 8  }
  0x34   :  { %46 = dma.hbm_to_vmem [thread:$0]  %s744_s2, 512, %s41_s22, [#allocation6], %s625_s0, %s625_s0, %s626_s24  }
  0x35   :  { %s627_s10 = smov [#allocation8]   ;;  %s570_s14 = scalar_lea.hbm %s746_s4, 512 }
  0x36   :  { %s54_s11 = sshll.u32 %s627_s10, 4  ;;  %p571_p10 = scmp.ne.s32.totalorder %s746_s4, %s570_s14  ;;  %s55_s11 = int_to_ptr.vmem [resolvable:$true] %s54_s11 }
  0x37   :  { %p574_p11 = scmp.lt.u32.totalorder %s570_s14, %s746_s4 }
  0x39   :  { %p576_p12 = pnand %p574_p11, %p571_p10 }
  0x3b   :  { %579 = shalt.err (!%p576_p12)
}
  0x3c   :  { %s580_s19 = scalar_lea.vmem %s55_s11, 512  ;;  %p585_p0 = scmp.lt.s32.totalorder %s55_s11, %s55_s11 }
  0x3d   :  { %p581_p13 = scmp.ne.s32.totalorder %s55_s11, %s580_s19  ;;  %p586_p1 = scmp.lt.s32.totalorder %s580_s19, %s580_s19 }
  0x3f   :  { %p587_p2 = por %p586_p1, %p585_p0 }
  0x41   :  { %p588_p3 = pnand %p587_p2, %p581_p13 }
  0x43   :  { %591 = shalt.err (!%p588_p3)
}
  0x44   :  { %60 = dma.hbm_to_vmem [thread:$0]  %s746_s4, 512, %s55_s11, [#allocation9], %s625_s0, %s625_s0, %s626_s24  }
  0x45   :  { %614 = dma.done.wait [#allocation3], 16  }
  0x46   :  { %615 = vsyncadd [#allocation3], 4294967280 }
  0x47   :  { %616 = dma.done.wait [#allocation6], 640  }
  0x48   :  { %617 = vsyncadd [#allocation6], 4294966656 }
  0x49   :  { %618 = dma.done.wait [#allocation9], 512  }
  0x4a   :  { %619 = vsyncadd [#allocation9], 4294966784  ;;  %v628_v0 = vmov 0.0|0.0   ;;  %vm629_vm0 = vmmov 0   ;;  %v630_v1 = vmov 0.0   ;;  %v156_v2 = vld [vmem:[#allocation8] sm:$0xff] }
  0x4b   :  { %483 = vmatprep.subr.bf16.mxu1 %v628_v0  ;;  %477 = vmatprep.subr.bf16.mxu0 %v628_v0  ;;  %v157_v3 = vld [vmem:[#allocation8 + $0x8] sm:$0xff]  ;;  %v76_v4 = vld [vmem:[#allocation7] sm:$0xff]  ;;  %v158_v7 = vld [vmem:[#allocation8 + $0x10] sm:$0xff]  ;;  %vm81_vm1 = vcmask 261120   ;;  %vm316_vm2 = vcmask 57344   ;;  %vm328_vm3 = vcmask 64512  }
  0x4c   :  { %464 = vmatprep.mubr.msk.f32.mxu1 %vm629_vm0, %v630_v1  ;;  %453 = vmatprep.mubr.msk.f32.mxu0 %vm629_vm0, %v630_v1  ;;  %v484_v5 = vpack.c.bf16 %v157_v3, %v156_v2  ;;  %v77_v6 = vld [vmem:[#allocation7 + $0x8] sm:$0xff]  ;;  %v159_v8 = vld [vmem:[#allocation8 + $0x18] sm:$0xff]  ;;  %v78_v10 = vld [vmem:[#allocation7 + $0x10] sm:$0xff]  ;;  %vm406_vm4 = vcmask 253952  }
  0x4d   :  { %v478_v9 = vpack.c.bf16 %v77_v6, %v76_v4  ;;  %v79_v11 = vld [vmem:[#allocation7 + $0x18] sm:$0xff]  ;;  %v487_v12 = vpack.c.bf16 %v159_v8, %v158_v7  ;;  %v75_v15 = vld [vmem:[#allocation2] sm:$0x1] }
  0x4e   :  { %485 = vmatpush3.bf16.msra.mxu1 %v484_v5  ;;  %v481_v13 = vpack.c.bf16 %v79_v11, %v78_v10  ;;  %v155_v14 = vld [vmem:[#allocation5] sm:$0xff]  ;;  %v426_v16 = vld [vmem:[%s747_s5] ss:$0 sm:$0xff]  ;;  %s632_s5 = smov [#allocation10]  }
  0x4f   :  { %479 = vmatpush3.bf16.msra.mxu0 %v478_v9  ;;  %486 = vmatprep.subr.bf16.mxu1 %v628_v0  ;;  %v80_v17 = vld [vmem:[%s745_s3] sm:$0x1]  ;;  %s631_s3 = smov 96   ;;  %s414_s23 = sshll.u32 %s632_s5, 4  ;;  %s415_s23 = int_to_ptr.vmem [resolvable:$true] %s414_s23 }
  0x50   :  { %480 = vmatprep.subr.bf16.mxu0 %v628_v0  ;;  %s592_s25 = scalar_lea.vmem %s415_s23, 16  ;;  %s596_s26 = scalar_lea.vmem %s415_s23, 32 }
  0x51   :  { %p593_p4 = scmp.ne.s32.totalorder %s415_s23, %s592_s25  ;;  %p597_p5 = scmp.lt.s32.totalorder %s415_s23, %s415_s23 }
  0x52   :  { %488 = vmatpush3.bf16.msra.mxu1 %v487_v12  ;;  %p598_p6 = scmp.lt.s32.totalorder %s596_s26, %s592_s25 }
  0x53   :  { %482 = vmatpush3.bf16.msra.mxu0 %v481_v13  ;;  %472 = vmatprep.subr.mxu1 %v630_v1 }
  0x54   :  { %467 = vmatprep.subr.mxu0 %v630_v1  ;;  %p599_p7 = por %p598_p6, %p597_p5 }
  0x55   :  { %465 = vmatmul.mubr.msk.f32.vlgmr.msra.gmra.mrb[0].mxu1 %vm81_vm1, %v155_v14 }
  0x56   :  { %454 = vmatmul.mubr.msk.f32.vlgmr.msra.gmra.mrb[0].mxu0 %vm81_vm1, %v75_v15  ;;  %474 = vmatprep.mubr.msk.f32.mxu1 %vm629_vm0, %v630_v1  ;;  %p600_p8 = pnand %p599_p7, %p593_p4 }
  0x57   :  { %469 = vmatprep.mubr.msk.f32.mxu0 %vm629_vm0, %v630_v1 }
 0x128   :  { %v236_v18 = vpop.f32.mrb[0].mxu1 }
 0x129   :  { %v237_v19 = vadd.f32 %v426_v16, %v236_v18  ;;  %v466_v20 = vpop.f32.mrb[1].mxu1  ;;  %v151_v21 = vpop.f32.mrb[0].mxu0 }
 0x12a   :  { %v152_v22 = vadd.f32 %v151_v21, %v80_v17  ;;  %v455_v23 = vpop.f32.mrb[1].mxu0 }
 0x12b   :  { %468 = vmatpush3.xpose.msk.msra.mxu0 %vm81_vm1, %v237_v19  ;;  %473 = vmatpush3.msra.mxu1 %v237_v19 }
 0x12e   :  { %470 = vmatmul.mubr.msk.f32.vlgmr.msra.gmra.mrb[2].mxu0 %vm81_vm1, %v152_v22 }
 0x201   :  { %v312_v24 = vpop.f32.mrb[2].mxu0 }
 0x202   :  { %v471_v25 = vpop.f32.mrb[3].mxu0  ;;  %v317_v26 = vsel %vm316_vm2, %v312_v24, -inf }
 0x203   :  { %318 = vmax.xlane.f32.xlu0 %v317_v26 }
 0x290   :  { %v319_v27 = vpop.xlane.xlu0 %318 }
 0x291   :  { %v320_v28 = vsub.f32 %v312_v24, %v319_v27 }
 0x293   :  { %v321_v29 = vmul.f32 1.442695, %v320_v28 }
 0x295   :  { %500 = vpow2.f32 %v321_v29 }
 0x29f   :  { %v501_v30 = vpop.eup %500 }
 0x2a0   :  { %v323_v31 = vsel %vm316_vm2, %v501_v30, 0.0 }
 0x2a1   :  { %324 = vadd.xlane.f32.xlu0 %v323_v31 }
 0x32e   :  { %v325_v32 = vpop.xlane.xlu0 %324 }
 0x32f   :  { %502 = vrcp.f32 %v325_v32 }
 0x339   :  { %v503_v33 = vpop.eup %502 }
 0x33a   :  { %v327_v34 = vmul.f32 %v503_v33, %v501_v30 }
 0x33c   :  { %475 = vmatmul.mubr.msk.f32.vlgmr.msra.gmra.mrb[2].mxu1 %vm328_vm3, %v327_v34 }
 0x40f   :  { %v398_v35 = vpop.f32.mrb[2].mxu1 }
 0x410   :  { %403 = vrot.lane.b32.xlu1 %v398_v35, %s631_s3  ;;  %v476_v36 = vpop.f32.mrb[3].mxu1 }
 0x482   :  { %v404_v37 = vpop.permute.xlu1 %403 }
 0x483   :  { %407 = vst.msk [vmem:[#allocation10] sm:$0x1] %vm406_vm4, %v404_v37 }
 0x484   :  { %603 = shalt.err (!%p600_p8)
}
 0x485   :  { %s604_s29 = scalar_lea.hbm %s748_s6, 16 }
 0x486   :  { %p605_p9 = scmp.ne.s32.totalorder %s748_s6, %s604_s29  ;;  %p608_p10 = scmp.lt.u32.totalorder %s604_s29, %s748_s6 }
 0x488   :  { %p610_p11 = pnand %p608_p10, %p605_p9 }
 0x48a   :  { %613 = shalt.err (!%p610_p11)
}
 0x48b   :  { %417 = dma.vmem_to_hbm [thread:$0]  %s415_s23, 16, %s748_s6, [#allocation4]  }
 0x48c   :  { %620 = dma.done.wait [#allocation4], 16  }
 0x48d   :  { %621 = vsyncadd [#allocation4], 4294967280 }
 0x48e   :  { %421 = vsyncpa [#allocation3], 1 }
 0x48f   :  { %422 = vsyncpa [#allocation6], 1 }
 0x490   :  { %423 = vsyncpa [#allocation9], 1 }
 0x491   :  { %424 = vsyncpa [#allocation4], 1 }

</bundles_post_ra>
